<compile_context>
chip_gen: v7x
topology: tpu7x:2x2x1
jax: 0.10.0
libtpu: 0.0.40
codegen_flags: <defaults>
</compile_context>

<pallas_src>
import math

import jax
import jax.numpy as jnp
from jax.experimental import pallas as pl
from jax.experimental.pallas import tpu as pltpu

_LANE = 128      # vreg lane width
_SUBLANE = 8     # vreg sublane count (f32)


def _round_up(n, m):
    return ((n + m - 1) // m) * m


def _qnet_kernel(x_ref, w1_ref, b1_ref, w2_ref, b2_ref, o_ref):
    # One batch tile: two MXU matmuls (f32 accumulate) + bias + ReLU, fused.
    x = x_ref[...]
    h = jnp.dot(x.astype(w1_ref.dtype), w1_ref[...],
                preferred_element_type=jnp.float32) + b1_ref[...]
    h = jnp.maximum(h, 0.0)                       # f32 elementwise (v5e-safe)
    y = jnp.dot(h.astype(w2_ref.dtype), w2_ref[...],
                preferred_element_type=jnp.float32) + b2_ref[...]
    o_ref[...] = y.astype(o_ref.dtype)


def pack_qnet_params(w1, b1, w2, b2, param_dtype=jnp.bfloat16):
    """Pack params for the kernel (done once, outside the hot path).

    w1: [in, hidden]   b1: [1, hidden]
    w2: [hidden, out]  b2: [1, out]

    Only the hidden dim is padded to the 128-lane width; input (11) and output
    (3) dims stay unpadded -- full-array block dims are legal and Mosaic pads
    sub-tile contraction/store dims internally.  Padded hidden units have bias
    0 -> relu 0 and zero W2 rows, so semantics are preserved exactly.

    bf16 weights are safe on v5e/v6e/v7x (MXU is bf16-native on all three and
    bias add + ReLU stay f32); they halve the per-call weight DMA.  Use
    param_dtype=jnp.float32 for bit-exact f32 matmuls.
    """
    in_size, hid = w1.shape
    hid2, out_size = w2.shape
    assert hid == hid2 and b1.shape == (1, hid) and b2.shape == (1, out_size)

    H = _round_up(hid, _LANE)

    w1p = jnp.zeros((in_size, H), param_dtype).at[:, :hid].set(w1.astype(param_dtype))
    b1p = jnp.zeros((1, H), jnp.float32).at[:, :hid].set(b1.astype(jnp.float32))
    w2p = jnp.zeros((H, out_size), param_dtype).at[:hid, :].set(w2.astype(param_dtype))
    b2p = b2.astype(jnp.float32).reshape(1, out_size)
    return (w1p, b1p, w2p, b2p), (in_size, out_size)


def linear_qnet_forward(x, packed_params, out_size, *, block_b=2048):
    """x: [B, in_size] f32; packed_params from pack_qnet_params -> [B, out_size]."""
    w1p, b1p, w2p, b2p = packed_params
    B, in_size = x.shape
    K, H = w1p.shape
    H2, N = w2p.shape
    assert in_size == K and H == H2 and N == out_size

    # Batch tile: a single grid step whenever B (rounded to 8 sublanes) fits
    # block_b; otherwise near-equal multiple-of-8 tiles so padded-batch waste
    # stays bounded (<8 rows per tile).  block_b=2048 keeps double-buffered
    # x/out tiles comfortably under v7x's 32 MiB scoped VMEM default.
    B8 = _round_up(B, _SUBLANE)
    if B8 <= block_b:
        TB = B8
    else:
        n_tiles = pl.cdiv(B8, block_b)
        TB = _round_up(pl.cdiv(B, n_tiles), _SUBLANE)
    B_pad = _round_up(B, TB)
    grid_b = B_pad // TB

    xp = x if B_pad == B else jnp.zeros((B_pad, in_size), x.dtype).at[:B, :].set(x)

    param_bytes = (w1p.size * w1p.dtype.itemsize + b1p.size * 4
                   + w2p.size * w2p.dtype.itemsize + b2p.size * 4)
    cost = pl.CostEstimate(
        flops=2 * B_pad * (in_size * H + H * N),
        transcendentals=0,
        bytes_accessed=B_pad * in_size * 4 + B_pad * N * 4 + param_bytes,
    )

    out = pl.pallas_call(
        _qnet_kernel,
        out_shape=jax.ShapeDtypeStruct((B_pad, N), jnp.float32),
        grid=(grid_b,),
        in_specs=[
            pl.BlockSpec((TB, in_size), lambda i: (i, 0)),   # x tile (pipelined)
            pl.BlockSpec((in_size, H), lambda i: (0, 0)),    # W1 resident
            pl.BlockSpec((1, H), lambda i: (0, 0)),          # b1 resident
            pl.BlockSpec((H, N), lambda i: (0, 0)),          # W2 resident
            pl.BlockSpec((1, N), lambda i: (0, 0)),          # b2 resident
        ],
        out_specs=pl.BlockSpec((TB, N), lambda i: (i, 0)),   # unpadded out store
        compiler_params=pltpu.CompilerParams(
            dimension_semantics=("parallel",)),              # harmless at grid=1
        cost_estimate=cost,
    )(xp, w1p, b1p, w2p, b2p)

    return out if B_pad == B else out[:B]


def init_linear_params(key, fan_in, fan_out, dtype=jnp.float32):
    """torch.nn.Linear default init: U(-1/sqrt(fan_in), 1/sqrt(fan_in))."""
    kw, kb = jax.random.split(key)
    bound = 1.0 / math.sqrt(fan_in)
    w = jax.random.uniform(kw, (fan_in, fan_out), dtype, -bound, bound)
    b = jax.random.uniform(kb, (1, fan_out), dtype, -bound, bound)
    return w, b


if __name__ == "__main__":
    # Small shapes consistent with the Snake-AI Q-net: state=11, hidden=32, actions=3.
    batch, input_size, hidden_size, output_size = 2, 11, 32, 3

    key = jax.random.PRNGKey(0)
    kx, k1, k2, kbig = jax.random.split(key, 4)

    x = jax.random.normal(kx, (batch, input_size), jnp.float32)
    w1, b1 = init_linear_params(k1, input_size, hidden_size)
    w2, b2 = init_linear_params(k2, hidden_size, output_size)

    ref_fn = lambda xx: jnp.maximum(xx @ w1 + b1, 0.0) @ w2 + b2

    # --- Exact f32-weight path ------------------------------------------------
    packed_f32, (_, out_sz) = pack_qnet_params(w1, b1, w2, b2,
                                               param_dtype=jnp.float32)
    fwd_f32 = jax.jit(lambda xx: linear_qnet_forward(xx, packed_f32, out_sz))

    # Inference-sized call (action selection).
    out = jax.block_until_ready(fwd_f32(x))
    assert out.shape == (batch, output_size)
    assert jnp.allclose(out, ref_fn(x), atol=1e-5, rtol=1e-5)

    # Replay-batch sized call (B=300 -> B_pad=304, grid=(1,)).
    xb = jax.random.normal(kbig, (300, input_size), jnp.float32)
    outb = jax.block_until_ready(fwd_f32(xb))
    assert outb.shape == (300, output_size)
    assert jnp.allclose(outb, ref_fn(xb), atol=1e-5, rtol=1e-5)

    # --- Default bf16-weight path (half the weight DMA; looser tolerance) -----
    packed_bf16, _ = pack_qnet_params(w1, b1, w2, b2)     # param_dtype=bf16
    fwd_bf16 = jax.jit(lambda xx: linear_qnet_forward(xx, packed_bf16, out_sz))

    out_bf = jax.block_until_ready(fwd_bf16(x))
    assert out_bf.shape == (batch, output_size)
    assert jnp.allclose(out_bf, ref_fn(x), atol=3e-2, rtol=3e-2)

    outb_bf = jax.block_until_ready(fwd_bf16(xb))
    assert outb_bf.shape == (300, output_size)
    assert jnp.allclose(outb_bf, ref_fn(xb), atol=3e-2, rtol=3e-2)

    print("KERNEL_OK")
</pallas_src>

<mosaic_0001>
module attributes {stable_mosaic.version = 11 : i64} {
  func.func @_qnet_kernel(%arg0: i32, %arg1: memref<8x11xf32, #tpu.memory_space<vmem>>, %arg2: memref<11x128xf32, #tpu.memory_space<vmem>>, %arg3: memref<1x128xf32, #tpu.memory_space<vmem>>, %arg4: memref<128x3xf32, #tpu.memory_space<vmem>>, %arg5: memref<1x3xf32, #tpu.memory_space<vmem>>, %arg6: memref<8x3xf32, #tpu.memory_space<vmem>>) attributes {dimension_semantics = [#tpu.dimension_semantics<parallel>], iteration_bounds = array<i64: 1>, scalar_prefetch = 0 : i64, scratch_operands = 0 : i64, tpu.core_type = #tpu.core_type<tc>, window_params = [{transform_indices = @transform_0, window_bounds = array<i64: 8, 11>}, {pipeline_mode = #tpu.pipeline_mode<synchronous>, transform_indices = @transform_1, window_bounds = array<i64: 11, 128>}, {pipeline_mode = #tpu.pipeline_mode<synchronous>, transform_indices = @transform_2, window_bounds = array<i64: 1, 128>}, {pipeline_mode = #tpu.pipeline_mode<synchronous>, transform_indices = @transform_3, window_bounds = array<i64: 128, 3>}, {pipeline_mode = #tpu.pipeline_mode<synchronous>, transform_indices = @transform_4, window_bounds = array<i64: 1, 3>}, {transform_indices = @transform_5, window_bounds = array<i64: 8, 3>}]} {
    %c0 = arith.constant 0 : index
    %c0_0 = arith.constant 0 : index
    %0 = vector.load %arg1[%c0, %c0_0] : memref<8x11xf32, #tpu.memory_space<vmem>>, vector<8x11xf32>
    %c0_1 = arith.constant 0 : index
    %c0_2 = arith.constant 0 : index
    %1 = vector.load %arg2[%c0_1, %c0_2] : memref<11x128xf32, #tpu.memory_space<vmem>>, vector<11x128xf32>
    %cst = arith.constant dense<0.000000e+00> : vector<8x128xf32>
    %2 = tpu.matmul %0, %1, %cst {dimension_numbers = #tpu.dot_dimension_numbers<[1], [0], [0], [1], [0, 0, 1, 1], [], []>} : vector<8x11xf32>, vector<11x128xf32>, vector<8x128xf32> -> vector<8x128xf32>
    %c0_3 = arith.constant 0 : index
    %c0_4 = arith.constant 0 : index
    %3 = vector.load %arg3[%c0_3, %c0_4] : memref<1x128xf32, #tpu.memory_space<vmem>>, vector<1x128xf32>
    %4 = vector.broadcast %3 : vector<1x128xf32> to vector<8x128xf32>
    %5 = arith.addf %2, %4 : vector<8x128xf32>
    %cst_5 = arith.constant 0.000000e+00 : f32
    %6 = vector.broadcast %cst_5 : f32 to vector<8x128xf32>
    %7 = arith.maximumf %5, %6 : vector<8x128xf32>
    %c0_6 = arith.constant 0 : index
    %c0_7 = arith.constant 0 : index
    %8 = vector.load %arg4[%c0_6, %c0_7] : memref<128x3xf32, #tpu.memory_space<vmem>>, vector<128x3xf32>
    %cst_8 = arith.constant dense<0.000000e+00> : vector<8x3xf32>
    %9 = tpu.matmul %7, %8, %cst_8 {dimension_numbers = #tpu.dot_dimension_numbers<[1], [0], [0], [1], [0, 0, 1, 1], [], []>} : vector<8x128xf32>, vector<128x3xf32>, vector<8x3xf32> -> vector<8x3xf32>
    %c0_9 = arith.constant 0 : index
    %c0_10 = arith.constant 0 : index
    %10 = vector.load %arg5[%c0_9, %c0_10] : memref<1x3xf32, #tpu.memory_space<vmem>>, vector<1x3xf32>
    %11 = vector.broadcast %10 : vector<1x3xf32> to vector<8x3xf32>
    %12 = arith.addf %9, %11 : vector<8x3xf32>
    %c0_11 = arith.constant 0 : index
    %c0_12 = arith.constant 0 : index
    %13 = vector.load %arg6[%c0_11, %c0_12] : memref<8x3xf32, #tpu.memory_space<vmem>>, vector<8x3xf32>
    tpu.vector_store %arg6[%c0_11, %c0_12], %12 {strides = array<i32>} : memref<8x3xf32, #tpu.memory_space<vmem>>, vector<8x3xf32>,
    return
  }
  func.func @transform_0(%arg0: i32) -> (i32, i32) {
    %c0_i32 = arith.constant 0 : i32
    %c0_i32_0 = arith.constant 0 : i32
    return %arg0, %c0_i32 : i32, i32
  }
  func.func @transform_1(%arg0: i32) -> (i32, i32) {
    %c0_i32 = arith.constant 0 : i32
    %c0_i32_0 = arith.constant 0 : i32
    %c0_i32_1 = arith.constant 0 : i32
    return %c0_i32, %c0_i32_0 : i32, i32
  }
  func.func @transform_2(%arg0: i32) -> (i32, i32) {
    %c0_i32 = arith.constant 0 : i32
    %c0_i32_0 = arith.constant 0 : i32
    %c0_i32_1 = arith.constant 0 : i32
    return %c0_i32, %c0_i32_0 : i32, i32
  }
  func.func @transform_3(%arg0: i32) -> (i32, i32) {
    %c0_i32 = arith.constant 0 : i32
    %c0_i32_0 = arith.constant 0 : i32
    %c0_i32_1 = arith.constant 0 : i32
    return %c0_i32, %c0_i32_0 : i32, i32
  }
  func.func @transform_4(%arg0: i32) -> (i32, i32) {
    %c0_i32 = arith.constant 0 : i32
    %c0_i32_0 = arith.constant 0 : i32
    %c0_i32_1 = arith.constant 0 : i32
    return %c0_i32, %c0_i32_0 : i32, i32
  }
  func.func @transform_5(%arg0: i32) -> (i32, i32) {
    %c0_i32 = arith.constant 0 : i32
    %c0_i32_0 = arith.constant 0 : i32
    return %arg0, %c0_i32 : i32, i32
  }
}

</mosaic_0001>

<bundles_post_ra>
// kernel: _lambda_.1
= control target key start
LH: loop header
LB: loop body
LE: loop exit
PB: predicated region body
PF: predicated region fallthrough
CT: control target
= control target key end

     0   :  { %10 = vsyncpa [#allocation3], 0  ;;  %s462_s0 = inlined_call_operand.vmem [shape: f32[8,11], index: 0, kind: input, shape index: {}]   ;;  %s463_s1 = inlined_call_operand.hbm [shape: f32[11,128], index: 1, kind: input, shape index: {}]   ;;  %s464_s2 = inlined_call_operand.vmem [shape: f32[1,128], index: 2, kind: input, shape index: {}]   ;;  %s465_s3 = inlined_call_operand.hbm [shape: f32[128,3], index: 3, kind: input, shape index: {}]   ;;  %s466_s4 = inlined_call_operand.vmem [shape: f32[1,3], index: 4, kind: input, shape index: {}]   ;;  %s467_s5 = inlined_call_operand.vmem [shape: f32[8,3], index: 5, kind: output, shape index: {}]  }
   0x1   :  { %11 = vsyncpa [#allocation5], 0  ;;  %s388_s18 = smov [#allocation2]   ;;  %s340_s22 = scalar_lea.hbm %s463_s1, 256 }
   0x2   :  { %s19_s19 = sshll.u32 %s388_s18, 4  ;;  %p341_p0 = scmp.ne.s32.totalorder %s463_s1, %s340_s22  ;;  %s20_s19 = int_to_ptr.vmem [resolvable:$true] %s19_s19 }
   0x3   :  { %p344_p1 = scmp.lt.u32.totalorder %s340_s22, %s463_s1 }
   0x5   :  { %p346_p2 = pnand %p344_p1, %p341_p0 }
   0x7   :  { %349 = shalt.err (!%p346_p2)
}
   0x8   :  { %s350_s27 = scalar_lea.vmem %s20_s19, 256  ;;  %p355_p4 = scmp.lt.s32.totalorder %s20_s19, %s20_s19 }
   0x9   :  { %p351_p3 = scmp.ne.s32.totalorder %s20_s19, %s350_s27  ;;  %p356_p5 = scmp.lt.s32.totalorder %s350_s27, %s350_s27 }
   0xb   :  { %p357_p6 = por %p356_p5, %p355_p4 }
   0xd   :  { %p358_p7 = pnand %p357_p6, %p351_p3 }
   0xf   :  { %361 = shalt.err (!%p358_p7)
}
  0x10   :  { %s389_s28 = smov 128   ;;  %s390_s29 = smov 8  }
  0x11   :  { %25 = dma.hbm_to_vmem [thread:$0]  %s463_s1, 256, %s20_s19, [#allocation3], %s389_s28, %s389_s28, %s390_s29  }
  0x12   :  { %s391_s7 = smov [#allocation4]   ;;  %s362_s11 = scalar_lea.hbm %s465_s3, 2048 }
  0x13   :  { %s33_s8 = sshll.u32 %s391_s7, 4  ;;  %p363_p8 = scmp.ne.s32.totalorder %s465_s3, %s362_s11  ;;  %s34_s8 = int_to_ptr.vmem [resolvable:$true] %s33_s8 }
  0x14   :  { %p366_p9 = scmp.lt.u32.totalorder %s362_s11, %s465_s3 }
  0x16   :  { %p368_p10 = pnand %p366_p9, %p363_p8 }
  0x18   :  { %371 = shalt.err (!%p368_p10)
}
  0x19   :  { %s372_s16 = scalar_lea.vmem %s34_s8, 2048  ;;  %p377_p12 = scmp.lt.s32.totalorder %s34_s8, %s34_s8 }
  0x1a   :  { %p373_p11 = scmp.ne.s32.totalorder %s34_s8, %s372_s16  ;;  %p378_p13 = scmp.lt.s32.totalorder %s372_s16, %s372_s16 }
  0x1c   :  { %p379_p0 = por %p378_p13, %p377_p12 }
  0x1e   :  { %p380_p1 = pnand %p379_p0, %p373_p11 }
  0x20   :  { %383 = shalt.err (!%p380_p1)
}
  0x21   :  { %39 = dma.hbm_to_vmem [thread:$0]  %s465_s3, 2048, %s34_s8, [#allocation5], %s389_s28, %s389_s28, %s390_s29  }
  0x22   :  { %384 = dma.done.wait [#allocation3], 256  }
  0x23   :  { %385 = vsyncadd [#allocation3], 4294967040 }
  0x24   :  { %386 = dma.done.wait [#allocation5], 2048  }
  0x25   :  { %387 = vsyncadd [#allocation5], 4294965248  ;;  %v392_v0 = vmov 0.0|0.0   ;;  %vm393_vm0 = vmmov 0   ;;  %v394_v1 = vmov 0.0   ;;  %vm62_vm1 = vcmask 1042432  }
  0x26   :  { %304 = vmatprep.subr.bf16.mxu0 %v392_v0  ;;  %308 = vmatprep.subr.bf16.mxu1 %v392_v0  ;;  %v49_v2 = vld [vmem:[#allocation2] sm:$0xff]  ;;  %v50_v3 = vld [vmem:[#allocation2 + $0x8] sm:$0x7]  ;;  %vm395_vm2 = vmmov 1   ;;  %v137_v5 = vld [vmem:[#allocation4] sm:$0xff]  ;;  %vm58_vm4 = vcmask 89088  }
  0x27   :  { %266 = vmatprep.mubr.msk.f32.mxu0 %vm393_vm0, %v394_v1  ;;  %301 = vmatprep.mubr.msk.f32.mxu1 %vm393_vm0, %v394_v1  ;;  %vm306_vm3 = vmpackc.low %vm62_vm1, %vm395_vm2  ;;  %v305_v4 = vpack.c.bf16 %v50_v3, %v49_v2  ;;  %v138_v6 = vld [vmem:[#allocation4 + $0x8] sm:$0xff]  ;;  %v139_v7 = vld [vmem:[#allocation4 + $0x10] sm:$0xff]  ;;  %vm230_vm5 = vcmask 23552  }
  0x28   :  { %v309_v8 = vpack.c.bf16 %v138_v6, %v137_v5  ;;  %v140_v9 = vld [vmem:[#allocation4 + $0x18] sm:$0xff]  ;;  %v48_v10 = vld [vmem:[%s462_s0] sm:$0xff]  ;;  %v141_v12 = vld [vmem:[#allocation4 + $0x20] sm:$0xff] }
  0x29   :  { %307 = vmatpush3.bf16.msk.msra.mxu0 %vm306_vm3, %v305_v4  ;;  %v312_v11 = vpack.c.bf16 %v140_v9, %v139_v7  ;;  %v142_v13 = vld [vmem:[#allocation4 + $0x28] sm:$0xff]  ;;  %v143_v15 = vld [vmem:[#allocation4 + $0x30] sm:$0xff]  ;;  %v144_v16 = vld [vmem:[#allocation4 + $0x38] sm:$0xff] }
  0x2a   :  { %310 = vmatpush3.bf16.msra.mxu1 %v309_v8  ;;  %v315_v14 = vpack.c.bf16 %v142_v13, %v141_v12  ;;  %v318_v17 = vpack.c.bf16 %v144_v16, %v143_v15  ;;  %v145_v18 = vld [vmem:[#allocation4 + $0x40] sm:$0xff]  ;;  %v146_v19 = vld [vmem:[#allocation4 + $0x48] sm:$0xff]  ;;  %v147_v21 = vld [vmem:[#allocation4 + $0x50] sm:$0xff] }
  0x2b   :  { %311 = vmatprep.subr.bf16.mxu1 %v392_v0  ;;  %v321_v20 = vpack.c.bf16 %v146_v19, %v145_v18  ;;  %v148_v22 = vld [vmem:[#allocation4 + $0x58] sm:$0xff]  ;;  %v149_v24 = vld [vmem:[#allocation4 + $0x60] sm:$0xff]  ;;  %v150_v25 = vld [vmem:[#allocation4 + $0x68] sm:$0xff] }
  0x2c   :  { %267 = vmatmul.mubr.msk.f32.vlgmr.msra.gmra.mrb[0].mxu0 %vm58_vm4, %v48_v10  ;;  %v324_v23 = vpack.c.bf16 %v148_v22, %v147_v21  ;;  %v327_v26 = vpack.c.bf16 %v150_v25, %v149_v24  ;;  %v151_v27 = vld [vmem:[#allocation4 + $0x70] sm:$0xff]  ;;  %v152_v28 = vld [vmem:[#allocation4 + $0x78] sm:$0xff] }
  0x2d   :  { %v330_v29 = vpack.c.bf16 %v152_v28, %v151_v27  ;;  %v238_v30 = vld [vmem:[%s464_s2] ss:$0 sm:$0xff] }
  0x2e   :  { %313 = vmatpush3.bf16.msra.mxu1 %v312_v11  ;;  %v241_v35 = vld [vmem:[%s466_s4] ss:$0 sm:$0xff] }
  0x2f   :  { %314 = vmatprep.subr.bf16.mxu1 %v392_v0 }
  0x32   :  { %316 = vmatpush3.bf16.msra.mxu1 %v315_v14 }
  0x33   :  { %317 = vmatprep.subr.bf16.mxu1 %v392_v0 }
  0x36   :  { %319 = vmatpush3.bf16.msra.mxu1 %v318_v17 }
  0x37   :  { %320 = vmatprep.subr.bf16.mxu1 %v392_v0 }
  0x3a   :  { %322 = vmatpush3.bf16.msra.mxu1 %v321_v20 }
  0x3b   :  { %323 = vmatprep.subr.bf16.mxu1 %v392_v0 }
  0x3e   :  { %325 = vmatpush3.bf16.msra.mxu1 %v324_v23 }
  0x3f   :  { %326 = vmatprep.subr.bf16.mxu1 %v392_v0 }
  0x42   :  { %328 = vmatpush3.bf16.msra.mxu1 %v327_v26 }
  0x43   :  { %329 = vmatprep.subr.bf16.mxu1 %v392_v0 }
  0x46   :  { %331 = vmatpush3.bf16.msra.mxu1 %v330_v29 }
  0xff   :  { %v132_v31 = vpop.f32.mrb[0].mxu0 }
 0x100   :  { %v133_v32 = vadd.f32 %v238_v30, %v132_v31  ;;  %v268_v33 = vpop.f32.mrb[1].mxu0 }
 0x102   :  { %v136_v34 = vmax.f32 %v133_v32, 0.0 }
 0x104   :  { %302 = vmatmul.mubr.f32.vlgmr.msra.gmra.mrb[0].mxu1 %v136_v34 }
 0x1d7   :  { %v226_v36 = vpop.f32.mrb[0].mxu1 }
 0x1d8   :  { %v227_v37 = vadd.f32 %v241_v35, %v226_v36  ;;  %v303_v38 = vpop.f32.mrb[1].mxu1 }
 0x1da   :  { %231 = vst.msk [vmem:[%s467_s5] sm:$0xff] %vm230_vm5, %v227_v37 }
 0x1db   :  { %236 = vsyncpa [#allocation3], 1 }
 0x1dc   :  { %237 = vsyncpa [#allocation5], 1 }

</bundles_post_ra>
